<compile_context>
chip_gen: v6e
topology: v6e:2x2x1
jax: 0.10.0
libtpu: 0.0.40
codegen_flags: <defaults>
</compile_context>

<pallas_src>
import jax
import jax.numpy as jnp
from jax.experimental import pallas as pl
from jax.experimental.pallas import tpu as pltpu

EPS = 1e-5


def _vmem_capacity_bytes():
    """Physical VMEM of the local TPU generation; conservative fallback."""
    try:
        return int(pltpu.get_tpu_info().vmem_capacity_bytes)
    except Exception:
        return 64 << 20  # v7x-sized fallback: safe on every generation


def _make_kernel(nb, hw_valid, hw_pad):
    inv_hw = 1.0 / float(hw_valid)
    needs_mask = hw_pad != hw_valid
    unroll = nb <= 4

    def kernel(x_ref, wa_ref, wcat_ref, o_ref):
        # x_ref:  (nb, C_in, HW_pad)    wa: (C_in, C_in)    wcat: (C_out, 2*C_in)
        # o_ref:  (nb, C_out, HW_pad)
        wa = wa_ref[...].astype(jnp.float32)      # loop-invariant: hoisted out of the loop
        wcat = wcat_ref[...].astype(jnp.float32)

        def body(i, carry):
            xf = x_ref[i].astype(jnp.float32)     # (C_in, HW), HW lane-dense

            # 1x1 convs == channel matmuls on the MXU.
            a = jnp.dot(wa, xf, preferred_element_type=jnp.float32)       # conva(x)
            t = jnp.concatenate([a * xf, xf], axis=0)                     # (2*C_in, HW)
            # conv2(a*x) + (conv2 o convb)(x), with the +/-1 mask folded into wcat.
            m = jnp.dot(wcat, t, preferred_element_type=jnp.float32)      # (C_out, HW)

            # InstanceNorm2d (affine=False, biased variance) over the spatial (lane) axis.
            mean = jnp.sum(m, axis=-1, keepdims=True) * inv_hw            # (C_out, 1)
            c = m - mean                                                  # centered once
            if needs_mask:  # keep padded lanes out of the statistics
                lane = jax.lax.broadcasted_iota(jnp.int32, c.shape, 1)
                c = jnp.where(lane < hw_valid, c, 0.0)
            var = jnp.sum(c * c, axis=-1, keepdims=True) * inv_hw
            y = c * jax.lax.rsqrt(var + EPS)

            o_ref[i] = jnp.maximum(y, 0.0).astype(o_ref.dtype)
            return carry

        jax.lax.fori_loop(0, nb, body, None, unroll=unroll)

    return kernel


def chanle_block(x_nchw, wa, wb, w2, mask_p, *, samples_per_step=None,
                 io_dtype=jnp.float32):
    """x_nchw: (N, C_in, H, W); wa/wb: (C_in, C_in); w2: (C_out, C_in); mask_p: (C_out,)."""
    N, C_in, H, W = x_nchw.shape
    C_out = w2.shape[0]
    assert wa.shape == (C_in, C_in) and wb.shape == (C_in, C_in), \
        "conva/convb must be C_in -> C_in (required by 'a * x + b')"
    assert w2.shape == (C_out, C_in) and mask_p.shape == (C_out,)

    HW = H * W
    HW_pad = ((HW + 127) // 128) * 128  # lane-dense stores for arbitrary H, W

    # ---- host-side algebraic folds (exact) ------------------------------------------
    w2m = w2.astype(jnp.float32) * mask_p.astype(jnp.float32).reshape(C_out, 1)
    w2b = w2m @ wb.astype(jnp.float32)                       # conv2 o convb
    wcat = jnp.concatenate([w2m, w2b], axis=1)               # (C_out, 2*C_in)
    wa_f = wa.astype(jnp.float32)

    # NCHW -> (N, C_in, HW): pure reshape (no transpose); pad lanes to a 128 multiple.
    x = x_nchw.reshape(N, C_in, HW).astype(io_dtype)
    if HW_pad != HW:
        x = jnp.pad(x, ((0, 0), (0, 0), (0, HW_pad - HW)))

    # ---- generation-aware block sizing + scoped-VMEM limit ---------------------------
    vmem_cap = _vmem_capacity_bytes()
    vmem_limit = (vmem_cap * 3) // 4          # ~96 MiB on v5e/v6e, ~48 MiB on v7x
    budget = (vmem_limit * 9) // 10

    io_bytes = jnp.dtype(io_dtype).itemsize

    def _tile_bytes(r, c):  # (8,128)-padded f32 footprint of a small 2-D weight
        return ((r + 7) // 8 * 8) * ((c + 127) // 128 * 128) * 4

    weight_bytes = 2 * (_tile_bytes(C_in, C_in) + _tile_bytes(C_out, 2 * C_in))
    # per-sample in-kernel intermediates (live range bounded by the fori_loop body)
    fixed_bytes = 4 * HW_pad * (4 * C_in + 3 * C_out)
    # double-buffered x block + f32 output block bytes, per sample
    per_sample = 2 * HW_pad * (C_in * io_bytes + C_out * 4)

    if samples_per_step is None:
        nb = max(1, (budget - weight_bytes - fixed_bytes) // per_sample)
        nb = int(min(nb, N))
        if N >= 2:
            nb = min(nb, max(1, N // 2))  # grid >= 2: v7x megacore + real pipeline overlap
    else:
        nb = int(samples_per_step)
        assert 1 <= nb <= N

    grid_n = pl.cdiv(N, nb)
    N_pad = grid_n * nb
    if N_pad != N:
        # Padded samples are all-zero; they normalize to exactly 0 (eps keeps it finite).
        x = jnp.pad(x, ((0, N_pad - N), (0, 0), (0, 0)))

    kernel = _make_kernel(nb, HW, HW_pad)

    out = pl.pallas_call(
        kernel,
        out_shape=jax.ShapeDtypeStruct((N_pad, C_out, HW_pad), jnp.float32),
        grid_spec=pltpu.PrefetchScalarGridSpec(
            num_scalar_prefetch=0,
            grid=(grid_n,),
            in_specs=[
                pl.BlockSpec((nb, C_in, HW_pad), lambda n: (n, 0, 0)),
                # Grid-invariant weights: tiny, constant index_map (their re-DMA/VMEM cost
                # is negligible next to the (nb, C, HW) slabs).
                pl.BlockSpec((C_in, C_in), lambda n: (0, 0)),
                pl.BlockSpec((C_out, 2 * C_in), lambda n: (0, 0)),
            ],
            out_specs=pl.BlockSpec((nb, C_out, HW_pad), lambda n: (n, 0, 0)),
        ),
        compiler_params=pltpu.CompilerParams(
            dimension_semantics=("parallel",),
            vmem_limit_bytes=int(vmem_limit),
        ),
    )(x, wa_f, wcat)

    # (N_pad, C_out, HW_pad) -> NCHW: slice padding away, pure reshape (no transpose).
    return out[:N, :, :HW].reshape(N, C_out, H, W)


def reference(x_nchw, wa, wb, w2, mask_p):
    # Pure-JAX reference mirroring the PyTorch module.
    a = jnp.einsum("nchw,oc->nohw", x_nchw, wa)
    b = jnp.einsum("nchw,oc->nohw", x_nchw, wb)
    t = a * x_nchw + b
    m = jnp.einsum("nchw,oc->nohw", t, w2) * mask_p.reshape(1, -1, 1, 1)
    mean = jnp.mean(m, axis=(2, 3), keepdims=True)
    var = jnp.mean((m - mean) ** 2, axis=(2, 3), keepdims=True)
    return jnp.maximum((m - mean) / jnp.sqrt(var + EPS), 0.0)


def _run_case(key, N, C_in, C_out, H, W):
    kx, ka, kb, k2 = jax.random.split(key, 4)
    x = jax.random.normal(kx, (N, C_in, H, W), dtype=jnp.float32)
    # Conv2d(c, c, 1, bias=False) weights have shape (c_out, c_in, 1, 1); keep (c_out, c_in).
    wa = jax.random.normal(ka, (C_in, C_in), dtype=jnp.float32) * 0.5
    wb = jax.random.normal(kb, (C_in, C_in), dtype=jnp.float32) * 0.5
    w2 = jax.random.normal(k2, (C_out, C_in), dtype=jnp.float32) * 0.5
    # Mask_1Chanle: ones, even channel indices set to -1.
    mask_p = jnp.where(jnp.arange(C_out) % 2 == 0, -1.0, 1.0).astype(jnp.float32)

    y = jax.block_until_ready(chanle_block(x, wa, wb, w2, mask_p))
    y_ref = reference(x, wa, wb, w2, mask_p)
    assert y.shape == (N, C_out, H, W)
    assert jnp.allclose(y, y_ref, atol=1e-4, rtol=1e-4), \
        f"mismatch vs reference for shape {(N, C_in, C_out, H, W)}"


if __name__ == "__main__":
    key = jax.random.PRNGKey(0)
    k0, k1 = jax.random.split(key)

    # Main (lane-aligned) case.
    _run_case(k0, N=2, C_in=4, C_out=8, H=16, W=16)
    # Padding paths: HW not a multiple of 128 and odd N (exercise the lane mask + N pad).
    _run_case(k1, N=3, C_in=4, C_out=8, H=15, W=15)

    print("KERNEL_OK")
</pallas_src>

<mosaic_0001>
module attributes {stable_mosaic.version = 11 : i64} {
  func.func @kernel(%arg0: i32, %arg1: memref<1x4x256xf32, #tpu.memory_space<vmem>>, %arg2: memref<4x4xf32, #tpu.memory_space<vmem>>, %arg3: memref<8x8xf32, #tpu.memory_space<vmem>>, %arg4: memref<1x8x256xf32, #tpu.memory_space<vmem>>) attributes {dimension_semantics = [#tpu.dimension_semantics<parallel>], iteration_bounds = array<i64: 2>, scalar_prefetch = 0 : i64, scratch_operands = 0 : i64, tpu.core_type = #tpu.core_type<tc>, window_params = [{transform_indices = @transform_0, window_bounds = array<i64: 1, 4, 256>}, {pipeline_mode = #tpu.pipeline_mode<synchronous>, transform_indices = @transform_1, window_bounds = array<i64: 4, 4>}, {pipeline_mode = #tpu.pipeline_mode<synchronous>, transform_indices = @transform_2, window_bounds = array<i64: 8, 8>}, {transform_indices = @transform_3, window_bounds = array<i64: 1, 8, 256>}]} {
    %c0 = arith.constant 0 : index
    %c0_0 = arith.constant 0 : index
    %0 = vector.load %arg2[%c0, %c0_0] : memref<4x4xf32, #tpu.memory_space<vmem>>, vector<4x4xf32>
    %c0_1 = arith.constant 0 : index
    %c0_2 = arith.constant 0 : index
    %1 = vector.load %arg3[%c0_1, %c0_2] : memref<8x8xf32, #tpu.memory_space<vmem>>, vector<8x8xf32>
    %c0_i32 = arith.constant 0 : i32
    %2 = arith.index_cast %c0_i32 : i32 to index
    %c0_3 = arith.constant 0 : index
    %c0_4 = arith.constant 0 : index
    %3 = vector.load %arg1[%2, %c0_3, %c0_4] : memref<1x4x256xf32, #tpu.memory_space<vmem>>, vector<1x4x256xf32>
    %4 = vector.shape_cast %3 : vector<1x4x256xf32> to vector<4x256xf32>
    %cst = arith.constant dense<0.000000e+00> : vector<4x256xf32>
    %5 = tpu.matmul %0, %4, %cst {dimension_numbers = #tpu.dot_dimension_numbers<[1], [0], [0], [1], [0, 0, 1, 1], [], []>} : vector<4x4xf32>, vector<4x256xf32>, vector<4x256xf32> -> vector<4x256xf32>
    %6 = arith.mulf %5, %4 : vector<4x256xf32>
    %7 = tpu.concatenate %6, %4 in 0 : vector<4x256xf32>, vector<4x256xf32> -> vector<8x256xf32>
    %cst_5 = arith.constant dense<0.000000e+00> : vector<8x256xf32>
    %8 = tpu.matmul %1, %7, %cst_5 {dimension_numbers = #tpu.dot_dimension_numbers<[1], [0], [0], [1], [0, 0, 1, 1], [], []>} : vector<8x8xf32>, vector<8x256xf32>, vector<8x256xf32> -> vector<8x256xf32>
    %cst_6 = arith.constant dense<0.000000e+00> : vector<8xf32>
    %9 = vector.multi_reduction <add>, %8, %cst_6 [1] : vector<8x256xf32> to vector<8xf32>
    %10 = vector.shape_cast %9 : vector<8xf32> to vector<8x1xf32>
    %cst_7 = arith.constant 3.906250e-03 : f32
    %11 = vector.broadcast %cst_7 : f32 to vector<8x1xf32>
    %12 = arith.mulf %10, %11 : vector<8x1xf32>
    %13 = vector.broadcast %12 : vector<8x1xf32> to vector<8x256xf32>
    %14 = arith.subf %8, %13 : vector<8x256xf32>
    %15 = arith.mulf %14, %14 : vector<8x256xf32>
    %cst_8 = arith.constant dense<0.000000e+00> : vector<8xf32>
    %16 = vector.multi_reduction <add>, %15, %cst_8 [1] : vector<8x256xf32> to vector<8xf32>
    %17 = vector.shape_cast %16 : vector<8xf32> to vector<8x1xf32>
    %cst_9 = arith.constant 3.906250e-03 : f32
    %18 = vector.broadcast %cst_9 : f32 to vector<8x1xf32>
    %19 = arith.mulf %17, %18 : vector<8x1xf32>
    %cst_10 = arith.constant 9.99999974E-6 : f32
    %20 = vector.broadcast %cst_10 : f32 to vector<8x1xf32>
    %21 = arith.addf %19, %20 : vector<8x1xf32>
    %22 = math.rsqrt %21 : vector<8x1xf32>
    %23 = vector.broadcast %22 : vector<8x1xf32> to vector<8x256xf32>
    %24 = arith.mulf %14, %23 : vector<8x256xf32>
    %cst_11 = arith.constant 0.000000e+00 : f32
    %25 = vector.broadcast %cst_11 : f32 to vector<8x256xf32>
    %26 = arith.maximumf %24, %25 : vector<8x256xf32>
    %27 = arith.index_cast %c0_i32 : i32 to index
    %c0_12 = arith.constant 0 : index
    %c0_13 = arith.constant 0 : index
    %28 = vector.load %arg4[%27, %c0_12, %c0_13] : memref<1x8x256xf32, #tpu.memory_space<vmem>>, vector<1x8x256xf32>
    %29 = vector.shape_cast %28 : vector<1x8x256xf32> to vector<8x256xf32>
    %30 = vector.shape_cast %26 : vector<8x256xf32> to vector<1x8x256xf32>
    tpu.vector_store %arg4[%27, %c0_12, %c0_13], %30 {strides = array<i32>} : memref<1x8x256xf32, #tpu.memory_space<vmem>>, vector<1x8x256xf32>,
    %c1_i32 = arith.constant 1 : i32
    return
  }
  func.func @transform_0(%arg0: i32) -> (i32, i32, i32) {
    %c0_i32 = arith.constant 0 : i32
    %c0_i32_0 = arith.constant 0 : i32
    %c0_i32_1 = arith.constant 0 : i32
    return %arg0, %c0_i32, %c0_i32_0 : i32, i32, i32
  }
  func.func @transform_1(%arg0: i32) -> (i32, i32) {
    %c0_i32 = arith.constant 0 : i32
    %c0_i32_0 = arith.constant 0 : i32
    %c0_i32_1 = arith.constant 0 : i32
    return %c0_i32, %c0_i32_0 : i32, i32
  }
  func.func @transform_2(%arg0: i32) -> (i32, i32) {
    %c0_i32 = arith.constant 0 : i32
    %c0_i32_0 = arith.constant 0 : i32
    %c0_i32_1 = arith.constant 0 : i32
    return %c0_i32, %c0_i32_0 : i32, i32
  }
  func.func @transform_3(%arg0: i32) -> (i32, i32, i32) {
    %c0_i32 = arith.constant 0 : i32
    %c0_i32_0 = arith.constant 0 : i32
    %c0_i32_1 = arith.constant 0 : i32
    return %arg0, %c0_i32, %c0_i32_0 : i32, i32, i32
  }
}

</mosaic_0001>

<bundles_post_ra>
// kernel: tpu_custom_call.1
= control target key start
LH: loop header
LB: loop body
LE: loop exit
PB: predicated region body
PF: predicated region fallthrough
CT: control target
= control target key end

     0   :  { %8 = vsyncpa [#allocation3], 0  ;;  %s950_s0 = inlined_call_operand.hbm [shape: f32[2,4,256], index: 0, kind: input, shape index: {}]   ;;  %s951_s1 = inlined_call_operand.hbm [shape: f32[4,4], index: 1, kind: input, shape index: {}]   ;;  %s952_s2 = inlined_call_operand.hbm [shape: f32[8,8], index: 2, kind: input, shape index: {}]   ;;  %s953_s3 = inlined_call_operand.hbm [shape: f32[2,8,256], index: 3, kind: output, shape index: {}]  }
   0x1   :  { %10 = vsyncpa [#allocation3 + $0x1], 0 }
   0x2   :  { %11 = vsyncpa [#allocation6], 0 }
   0x3   :  { %12 = vsyncpa [#allocation4], 0 }
   0x4   :  { %14 = vsyncpa [#allocation4 + $0x1], 0  ;;  %s774_s12 = smov 0   ;;  %s776_s13 = smov 0  }
   0x5   :  { %s778_s14 = smov 0   ;;  %s780_s15 = smov 0  }
   0x6 LB: > { %s795_s16 = sadd.s32 4294967295, %s747_s15   ;;  %s503_s17 = sadd.s32 4294967294, %s747_s15   ;;  %s747_s15 = sphi %s780_s15, %s975_s15   ;;  %s743_s14 = sphi %s778_s14, %s974_s14   ;;  %s739_s13 = sphi %s776_s13, %s973_s13   ;;  %s735_s12 = sphi %s774_s12, %s972_s12  }
   0x7   : > { %p40_p0 = scmp.ne.s32.totalorder %s739_s13, %s735_s12  ;;  %p954_p1 = scmp.eq.s32.totalorder %s795_s16, 0 }
   0x8   : > { %p112_p3 = scmp.eq.s32.totalorder %s503_s17, 1  ;;  %p504_p5 = scmp.ge.s32.totalorder %s747_s15, 1 }
   0x9   : > { %p804_p4 = por %p954_p1, %p40_p0  ;;  %p119_p7 = scmp.lt.s32.totalorder %s747_s15, 3 }
   0xa   : > { %p809_p6 = por %p112_p3, %p40_p0  ;;  %s749_s21 = smov [#allocation5]  }
   0xb   : > { %s958_s18 = scalar_select %p804_p4, 1, 0 }
   0xc   : > { %s959_s19 = scalar_select %p809_p6, 1, 0 }
   0xd   : > { %p814_p8 = pnand %p504_p5, %p119_p7  ;;  %s132_s22 = sshll.u32 %s749_s21, 4  ;;  %s133_s22 = int_to_ptr.vmem [resolvable:$true] %s132_s22 }
   0xe   : > { %s750_s23 = smov [#allocation7]   ;;  %s828_s26 = sadd.s32 1, %s747_s15  }
   0xf   : > { %s960_s20 = scalar_select %p814_p8, 1, 0 }
  0x10   : > { %p539_p10 = pneg %p814_p8  ;;  %s143_s24 = sshll.u32 %s750_s23, 4  ;;  %s144_s24 = int_to_ptr.vmem [resolvable:$true] %s143_s24 }
  0x11   : > { %s24_s27 = ssub.s32 %s747_s15, %s828_s26  ;;  %s610_s28 = scalar_lea.vmem %s133_s22, 64 }
  0x12   : > { %p823_p11 = pnand %p539_p10, %p954_p1  ;;  %p611_p13 = scmp.ne.s32.totalorder %s133_s22, %s610_s28 }
  0x13   : > { %p618_p5 = scmp.lt.s32.totalorder %s133_s22, %s133_s22  ;;  %p619_p7 = scmp.lt.s32.totalorder %s610_s28, %s610_s28 }
  0x14   : > { %p601_p12 = pneg %p823_p11 }
  0x15   : > { %p620_p10 = por %p619_p7, %p618_p5 }
  0x16   : > { %p613_p0 = pnand %p611_p13, %p601_p12 }
  0x18   : > { %p614_p3 = pneg %p613_p0 }
  0x1a   : > { %p621_p9 = pnand %p620_p10, %p614_p3 }
  0x1c   : > { %624 = shalt.err (!%p621_p9)
}
  0x1d   : > { %542 = dma.hbm_to_vmem [thread:$0]  (!%p823_p11), %s951_s1, 64, %s133_s22, [#allocation6]  }
  0x1e   : > { %s636_s4 = scalar_lea.vmem %s144_s24, 128  ;;  %p644_p13 = scmp.lt.s32.totalorder %s144_s24, %s144_s24 }
  0x1f   : > { %p637_p1 = scmp.ne.s32.totalorder %s144_s24, %s636_s4  ;;  %p645_p0 = scmp.lt.s32.totalorder %s636_s4, %s636_s4 }
  0x21   : > { %p639_p2 = pnand %p637_p1, %p601_p12  ;;  %p646_p4 = por %p645_p0, %p644_p13 }
  0x23   : > { %p640_p6 = pneg %p639_p2 }
  0x25   : > { %p647_p8 = pnand %p646_p4, %p640_p6 }
  0x27   : > { %650 = shalt.err (!%p647_p8)
}
  0x28   : > { %545 = dma.hbm_to_vmem [thread:$0]  (!%p823_p11), %s952_s2, 128, %s144_s24, [#allocation6]  }
  0x29   : > { %p25_p1 = scmp.eq.s32.totalorder %s24_s27, 0  ;;  %s27_s7 = sadd.s32 1, %s743_s14 }
  0x2a   : > { %p34_p2 = scmp.ne.s32.totalorder %s743_s14, %s739_s13  ;;  %p35_p4 = scmp.eq.s32.totalorder %s747_s15, 0 }
  0x2b   : > { %s855_s8 = scalar_select %p25_p1, %s743_s14, %s27_s7  }
  0x2c   : > { %p36_p6 = por %p35_p4, %p34_p2  ;;  %p962_p8 = scmp.eq.s32.totalorder %s795_s16, 1 }
  0x2d   : > { %p556_p12 = scmp.lt.s32.totalorder %s747_s15, 2  ;;  %s154_s10 = sand.u32 1, %s743_s14  }
  0x2e   : > { %p859_p9 = por %p962_p8, %p34_p2  ;;  %s508_s11 = sshll.u32 %s154_s10, 3 }
  0x2f   : > { %s525_s17 = sshll.u32 %s747_s15, 7  ;;  %s158_s24 = scalar_lea.vmem [#allocation2], %s508_s11 }
  0x30   : > { %s963_s9 = scalar_select %p859_p9, 1, 0 }
  0x31   : > { %s869_s23 = scalar_lea.hbm %s950_s0, %s525_s17  ;;  %s166_s25 = sshll.u32 %s158_s24, 4  ;;  %s167_s25 = int_to_ptr.vmem [resolvable:$true] %s166_s25 }
  0x32   : > { %p871_p11 = pnand %p556_p12, %p36_p6  ;;  %s155_s28 = scalar_lea.sflag [#allocation3], %s154_s10 }
  0x33   : > { %s651_s29 = scalar_lea.hbm %s869_s23, 128  ;;  %s656_s5 = scalar_lea.hbm %s950_s0, 256 }
  0x34   : > { %p652_p3 = scmp.ne.s32.totalorder %s869_s23, %s651_s29  ;;  %p653_p5 = pneg %p871_p11 }
  0x35   : > { %p657_p13 = scmp.lt.s32.totalorder %s869_s23, %s950_s0  ;;  %p658_p0 = scmp.lt.s32.totalorder %s656_s5, %s651_s29 }
  0x36   : > { %p654_p7 = pnand %p653_p5, %p652_p3 }
  0x37   : > { %p659_p1 = por %p658_p0, %p657_p13 }
  0x38   : > { %p655_p10 = pneg %p654_p7 }
  0x3a   : > { %p660_p2 = pnand %p659_p1, %p655_p10 }
  0x3c   : > { %663 = shalt.err (!%p660_p2)
}
  0x3d   : > { %s664_s11 = scalar_lea.vmem %s167_s25, 128  ;;  %s751_s10 = smov [#allocation2]  }
  0x3e   : > { %p665_p4 = scmp.ne.s32.totalorder %s167_s25, %s664_s11  ;;  %s669_s17 = sshll.u32 %s751_s10, 4  ;;  %s670_s17 = int_to_ptr.vmem [resolvable:$false] %s669_s17 }
  0x3f   : > { %s671_s21 = scalar_lea.vmem %s670_s17, 256  ;;  %p672_p12 = scmp.lt.s32.totalorder %s167_s25, %s670_s17 }
  0x40   : > { %p667_p6 = pnand %p665_p4, %p653_p5  ;;  %p673_p3 = scmp.lt.s32.totalorder %s671_s21, %s664_s11 }
  0x42   : > { %p668_p8 = pneg %p667_p6  ;;  %p674_p7 = por %p673_p3, %p672_p12 }
  0x44   : > { %p675_p9 = pnand %p674_p7, %p668_p8 }
  0x46   : > { %678 = shalt.err (!%p675_p9)
}
  0x47   : > { %549 = dma.hbm_to_vmem [thread:$0]  (!%p871_p11), %s869_s23, 128, %s167_s25, %s155_s28  }
  0x48   : > { %p965_p10 = scmp.ne.s32.totalorder %s960_s20, 0 }
  0x49   : > { %s892_s22 = sand.u32 (!%p965_p10), 1, %s739_s13   ;;  %p966_p5 = scmp.ne.s32.totalorder (!%p965_p10), %s958_s18, 0 }
  0x4a   : > { %175 = sbr.rel (%p965_p10) target bundleno = 804 (0x324), region = 32  ;;  %s512_s24 = sshll.u32 (!%p965_p10), %s892_s22, 3 }
  0x4b   : > { %s178_s29 = scalar_lea.sflag (!%p965_p10), [#allocation3], %s892_s22  ;;  %s181_s30 = scalar_lea.vmem (!%p965_p10), [#allocation2], %s512_s24 }
  0x4f   : > { %722 = dma.done.wait (%p966_p5), %s178_s29, 128  }
  0x50   : > { %724 = vsyncadd (%p966_p5), %s178_s29, 4294967168  ;;  %p967_p9 = scmp.eq.s32.totalorder %s795_s16, 0 }
  0x52   : > { %726 = dma.done.wait (%p967_p9), [#allocation6], 192   ;;  %p968_p11 = pmov %p967_p9 }
  0x53   : > { %v752_v0 = vmov 0.0   ;;  %v214_v1 = vld [vmem:[%s181_s30] sm:$0xff]  ;;  %vm221_vm0 = vcmask 1043456   ;;  %v212_v3 = vld [vmem:[#allocation5] sm:$0xf]  ;;  %vm217_vm1 = vcmask 31744  }
  0x54   : > { %728 = vsyncadd (%p968_p11), [#allocation6], 4294967104  ;;  %290 = vmatprep.mubr.f32.mxu0 %v752_v0  ;;  %372 = vmatprep.mubr.f32.mxu1 %v752_v0  ;;  %v216_v2 = vcombine.high %v214_v1, %v214_v1  ;;  %v300_v7 = vcombine.low %v214_v1, %v214_v1  ;;  %v213_v10 = vld [vmem:[#allocation7] sm:$0xff]  ;;  %vm304_vm2 = vcmask 64512   ;;  %s515_s18 = sshll.u32 %s892_s22, 4  ;;  %s526_s20 = sshll.u32 %s795_s16, 8 }
  0x55   : > { %s211_s23 = scalar_lea.vmem [#allocation8], %s515_s18  ;;  %s913_s4 = scalar_lea.hbm %s953_s3, %s526_s20 }
  0x56   : > { %516 = vmatprep.subr.msk.mxu0 %vm221_vm0, %v216_v2  ;;  %s414_s25 = sshll.u32 %s211_s23, 4  ;;  %s400_s5 = scalar_lea.sflag [#allocation4], %s892_s22  ;;  %s415_s25 = int_to_ptr.vmem [resolvable:$true] %s414_s25 }
  0x57   : > { %517 = vmatpush1.msk.msra.mxu0 %vm221_vm0, %v214_v1  ;;  %s679_s6 = scalar_lea.vmem %s415_s25, 256  ;;  %p969_p0 = scmp.ne.s32.totalorder %s963_s9, 0 }
  0x58   : > { %518 = vmatmul.mubr.msk.f32.vlgmr.msra.gmra.mxu0 %vm217_vm1, %v212_v3  ;;  %p680_p13 = scmp.ne.s32.totalorder %s415_s25, %s679_s6  ;;  %s753_s16 = smov [#allocation8]  }
  0x59   : > { %s683_s7 = sshll.u32 %s753_s16, 4  ;;  %s684_s7 = int_to_ptr.vmem [resolvable:$false] %s683_s7 }
  0x5a   : > { %p681_p1 = pnand %p680_p13, %p969_p0  ;;  %s685_s11 = scalar_lea.vmem %s684_s7, 512 }
  0x5b   : > { %p686_p4 = scmp.lt.s32.totalorder %s415_s25, %s684_s7  ;;  %p687_p6 = scmp.lt.s32.totalorder %s685_s11, %s679_s6 }
  0x5c   : > { %p682_p2 = pneg %p681_p1 }
  0x5d   : > { %p688_p8 = por %p687_p6, %p686_p4 }
  0x5f   : > { %p689_p12 = pnand %p688_p8, %p682_p2 }
 0x118   : > { %v292_v4 = vpop.f32.mrf.mxu0 }
 0x119   : > { %v298_v5 = vmul.f32 %v292_v4, %v214_v1 }
 0x11a   : > { %v294_v6 = vpop.f32.mrf.mxu0 }
 0x11b   : > { %v299_v8 = vmul.f32 %v294_v6, %v216_v2  ;;  %v302_v11 = vsel %vm221_vm0, %v298_v5, %v300_v7 }
 0x11d   : > { %v303_v9 = vsel %vm221_vm0, %v299_v8, %v214_v1 }
 0x11e   : > { %338 = vmatprep.subr.mxu1 %v303_v9 }
 0x11f   : > { %339 = vmatpush1.msra.mxu1 %v302_v11 }
 0x120   : > { %519 = vmatmul.mubr.msk.f32.vlgmr.msra.gmra.mxu1 %vm304_vm2, %v213_v10 }
 0x1e0   : > { %v374_v12 = vpop.f32.mrf.mxu1 }
 0x1e2   : > { %v376_v13 = vpop.f32.mrf.mxu1 }
 0x1e3   : > { %v379_v14 = vadd.f32 %v376_v13, %v374_v12 }
 0x1e5   : > { %380 = vadd.xlane.f32.xlu0 %v379_v14 }
 0x26e   : > { %v381_v15 = vpop.xlane.xlu0 %380 }
 0x26f   : > { %v382_v16 = vmul.f32 0.00390625, %v381_v15 }
 0x271   : > { %v383_v17 = vsub.f32 %v374_v12, %v382_v16  ;;  %v384_v18 = vsub.f32 %v376_v13, %v382_v16 }
 0x273   : > { %v385_v19 = vmul.f32 %v383_v17, %v383_v17  ;;  %v386_v20 = vmul.f32 %v384_v18, %v384_v18 }
 0x275   : > { %v387_v21 = vadd.f32 %v386_v20, %v385_v19 }
 0x277   : > { %388 = vadd.xlane.f32.xlu0 %v387_v21 }
 0x300   : > { %v389_v22 = vpop.xlane.xlu0 %388 }
 0x301   : > { %v390_v23 = vmul.f32 0.00390625, %v389_v22 }
 0x303   : > { %v391_v24 = vadd.f32 1e-05, %v390_v23 }
 0x305   : > { %597 = vrsqrt.f32 %v391_v24 }
 0x312   : > { %v598_v25 = vpop.eup %597 }
 0x313   : > { %v393_v26 = vmul.f32 %v598_v25, %v383_v17  ;;  %v394_v27 = vmul.f32 %v598_v25, %v384_v18 }
 0x315   : > { %v395_v28 = vmax.f32 %v393_v26, 0.0  ;;  %v396_v29 = vmax.f32 %v394_v27, 0.0 }
 0x317   : > { %397 = vst [vmem:[%s211_s23] sm:$0xff] %v395_v28  ;;  %398 = vst [vmem:[%s211_s23 + $0x8] sm:$0xff] %v396_v29 }
 0x318   : > { %692 = shalt.err (!%p689_p12)
}
 0x319   : > { %s693_s10 = scalar_lea.hbm %s913_s4, 256  ;;  %s697_s22 = scalar_lea.hbm %s953_s3, 512 }
 0x31a   : > { %p694_p3 = scmp.ne.s32.totalorder %s913_s4, %s693_s10  ;;  %p698_p5 = scmp.lt.s32.totalorder %s913_s4, %s953_s3 }
 0x31b   : > { %p699_p9 = scmp.lt.s32.totalorder %s697_s22, %s693_s10 }
 0x31c   : > { %p695_p7 = pnand %p694_p3, %p969_p0 }
 0x31d   : > { %p700_p11 = por %p699_p9, %p698_p5 }
 0x31e   : > { %p696_p10 = pneg %p695_p7 }
 0x320   : > { %p701_p13 = pnand %p700_p11, %p696_p10 }
 0x322   : > { %704 = shalt.err (!%p701_p13)
}
 0x323   : > { %537 = dma.vmem_to_hbm [thread:$0]  (%p969_p0), %s415_s25, 256, %s913_s4, %s400_s5  }
 0x324 PF: > { %s426_s30 = sand.u32 1, %s735_s12   ;;  %p970_p1 = scmp.ne.s32.totalorder %s959_s19, 0 }
 0x325   : > { %p971_p2 = scmp.ge.s32.totalorder %s747_s15, 2  ;;  %s427_s18 = scalar_lea.sflag [#allocation4], %s426_s30 }
 0x327   : > { %p551_p4 = pnand %p971_p2, %p970_p1 }
 0x329   : > { %p552_p6 = pneg %p551_p4 }
 0x32b   : > { %730 = dma.done.wait (%p552_p6), %s427_s18, 256  }
 0x32c   : > { %732 = vsyncadd (%p552_p6), %s427_s18, 4294967040  ;;  %p17_p8 = scmp.ge.s32.totalorder %s828_s26, 4   ;;  %s972_s12 = smov %s739_s13 }
 0x32d   : > { %s973_s13 = smov %s743_s14  ;;  %s974_s14 = smov %s855_s8 }
 0x32e   : > { %s975_s15 = smov %s828_s26  ;;  %19 = sbr.rel (!%p17_p8) target bundleno = 6 (0x6), region = 85 }
 0x333   :  { %432 = vsyncpa [#allocation3], 1 }
 0x334   :  { %434 = vsyncpa [#allocation3 + $0x1], 1 }
 0x335   :  { %435 = vsyncpa [#allocation6], 1 }
 0x336   :  { %436 = vsyncpa [#allocation4], 1 }
 0x337   :  { %438 = vsyncpa [#allocation4 + $0x1], 1 }

</bundles_post_ra>
